<compile_context>
chip_gen: v7x
topology: tpu7x:2x2x1
jax: 0.10.0
libtpu: 0.0.40
codegen_flags: <defaults>
</compile_context>

<pallas_src>
import functools

import jax
import jax.numpy as jnp
from jax import lax
from jax.experimental import pallas as pl
from jax.experimental.pallas import tpu as pltpu


def _triplet_kernel(x_ref, tcol_ref, trow_ref, loss_ref, corr_ref, *, margin: float):
    n = x_ref.shape[0]
    x = x_ref[...]                                       # (n, d) f32
    xsq = x * x

    # Squared norms.  Column orientation: plain lane reduce.  Row orientation:
    # a (1, d) x (n, d) contraction on the MXU -- effectively a transpose of
    # sq_col without an XLU relayout of an (n, 1) array.
    sq_col = jnp.sum(xsq, axis=1, keepdims=True)         # (n, 1)
    ones_row = jnp.ones((1, x.shape[1]), jnp.float32)
    sq_row = lax.dot_general(ones_row, xsq, (((1,), (1,)), ((), ())),
                             preferred_element_type=jnp.float32,
                             precision=lax.Precision.HIGHEST)        # (1, n)

    # Gram matrix x @ x.T; explicit HIGHEST precision to match the f32 reference.
    gram = lax.dot_general(x, x, (((1,), (1,)), ((), ())),
                           preferred_element_type=jnp.float32,
                           precision=lax.Precision.HIGHEST)          # (n, n)

    # Squared pairwise distances, clamped like the reference (clamp(min=1e-12)).
    d2 = jnp.maximum(sq_col + sq_row - 2.0 * gram, jnp.float32(1e-12))

    # Same-label mask (diagonal included, as in the PyTorch code); one mask reused
    # for both selects.  (If a row had no negative, an2 = +inf and its hinge term
    # falls to 0; the PyTorch original would error on an empty masked_select.)
    same = tcol_ref[...] == trow_ref[...]                # (n, n) via broadcast compare

    ap2 = jnp.max(jnp.where(same, d2, jnp.float32(-jnp.inf)), axis=1, keepdims=True)
    an2 = jnp.min(jnp.where(same, jnp.float32(jnp.inf), d2), axis=1, keepdims=True)

    # sqrt only the 2*n mined values (EUP); the count never touches the sqrt path.
    dist_ap = jnp.sqrt(ap2)                              # (n, 1)
    dist_an = jnp.sqrt(an2)                              # (n, 1)

    # MarginRankingLoss(y=1, reduction='mean'): mean(max(0, dist_ap - dist_an + margin)).
    hinge = jnp.maximum(dist_ap - dist_an + jnp.float32(margin), 0.0)
    loss_ref[0] = jnp.sum(hinge) * jnp.float32(1.0 / n)
    corr_ref[0] = jnp.sum(jnp.where(an2 >= ap2, 1.0, 0.0)).astype(jnp.int32)


def ori_triplet_loss(inputs, targets, margin: float = 0.3):
    """Pallas implementation of OriTripletLoss.forward.

    Args:
      inputs:  (n, d) float feature matrix.
      targets: (n,)   integer labels.
    Returns:
      (loss, correct): scalar f32 loss, scalar int32 count of dist_an >= dist_ap.
    """
    n, d = inputs.shape
    x = inputs.astype(jnp.float32)
    t = targets.astype(jnp.int32)
    t_col = t.reshape(n, 1)
    t_row = t.reshape(1, n)

    kernel = functools.partial(_triplet_kernel, margin=float(margin))
    loss, correct = pl.pallas_call(
        kernel,
        out_shape=(jax.ShapeDtypeStruct((1,), jnp.float32),
                   jax.ShapeDtypeStruct((1,), jnp.int32)),
        in_specs=[pl.BlockSpec(memory_space=pltpu.MemorySpace.VMEM)] * 3,
        out_specs=(pl.BlockSpec(memory_space=pltpu.MemorySpace.SMEM),
                   pl.BlockSpec(memory_space=pltpu.MemorySpace.SMEM)),
    )(x, t_col, t_row)
    return loss[0], correct[0]


def _reference(inputs, targets, margin=0.3):
    """Plain-JAX reference mirroring the PyTorch code (for a sanity check)."""
    x = inputs.astype(jnp.float32)
    sq = jnp.sum(x * x, axis=1, keepdims=True)
    gram = jnp.matmul(x, x.T, precision=jax.lax.Precision.HIGHEST)
    d2 = sq + sq.T - 2.0 * gram
    dist = jnp.sqrt(jnp.maximum(d2, 1e-12))
    mask = targets[:, None] == targets[None, :]
    dist_ap = jnp.max(jnp.where(mask, dist, -jnp.inf), axis=1)
    dist_an = jnp.min(jnp.where(mask, jnp.inf, dist), axis=1)
    loss = jnp.mean(jnp.maximum(dist_ap - dist_an + margin, 0.0))
    correct = jnp.sum((dist_an >= dist_ap).astype(jnp.int32))
    return loss, correct


if __name__ == "__main__":
    key = jax.random.PRNGKey(0)
    batch, feat_dim = 8, 32
    inputs = jax.random.normal(key, (batch, feat_dim), dtype=jnp.float32)
    # 4 classes, 2 samples each: every row has at least one positive and one negative.
    targets = jnp.array([0, 0, 1, 1, 2, 2, 3, 3], dtype=jnp.int32)

    loss, correct = ori_triplet_loss(inputs, targets, margin=0.3)
    jax.block_until_ready((loss, correct))

    ref_loss, ref_correct = _reference(inputs, targets, margin=0.3)
    assert abs(float(loss) - float(ref_loss)) < 1e-4, (loss, ref_loss)
    assert int(correct) == int(ref_correct), (correct, ref_correct)

    print("KERNEL_OK")
</pallas_src>

<mosaic_0001>
module attributes {stable_mosaic.version = 11 : i64} {
  func.func @_triplet_kernel(%arg0: memref<8x32xf32, #tpu.memory_space<vmem>>, %arg1: memref<8x1xi32, #tpu.memory_space<vmem>>, %arg2: memref<1x8xi32, #tpu.memory_space<vmem>>, %arg3: memref<1xf32, #tpu.memory_space<smem>>, %arg4: memref<1xi32, #tpu.memory_space<smem>>) attributes {dimension_semantics = [], scalar_prefetch = 0 : i64, scratch_operands = 0 : i64, tpu.core_type = #tpu.core_type<tc>} {
    %c0 = arith.constant 0 : index
    %c0_0 = arith.constant 0 : index
    %0 = vector.load %arg0[%c0, %c0_0] : memref<8x32xf32, #tpu.memory_space<vmem>>, vector<8x32xf32>
    %1 = arith.mulf %0, %0 : vector<8x32xf32>
    %cst = arith.constant dense<0.000000e+00> : vector<8xf32>
    %2 = vector.multi_reduction <add>, %1, %cst [1] : vector<8x32xf32> to vector<8xf32>
    %3 = vector.shape_cast %2 : vector<8xf32> to vector<8x1xf32>
    %cst_1 = arith.constant 1.000000e+00 : f32
    %4 = vector.broadcast %cst_1 : f32 to vector<1x32xf32>
    %cst_2 = arith.constant dense<0.000000e+00> : vector<1x8xf32>
    %5 = tpu.matmul %4, %1, %cst_2 {dimension_numbers = #tpu.dot_dimension_numbers<[1], [1], [0], [0], [0, 0, 1, 0], [], []>, precision = #tpu.contract_precision<fp32>} : vector<1x32xf32>, vector<8x32xf32>, vector<1x8xf32> -> vector<1x8xf32>
    %cst_3 = arith.constant dense<0.000000e+00> : vector<8x8xf32>
    %6 = tpu.matmul %0, %0, %cst_3 {dimension_numbers = #tpu.dot_dimension_numbers<[1], [1], [0], [0], [0, 0, 1, 0], [], []>, precision = #tpu.contract_precision<fp32>} : vector<8x32xf32>, vector<8x32xf32>, vector<8x8xf32> -> vector<8x8xf32>
    %7 = vector.broadcast %3 : vector<8x1xf32> to vector<8x8xf32>
    %8 = vector.broadcast %5 : vector<1x8xf32> to vector<8x8xf32>
    %9 = arith.addf %7, %8 : vector<8x8xf32>
    %cst_4 = arith.constant 2.000000e+00 : f32
    %10 = vector.broadcast %cst_4 : f32 to vector<8x8xf32>
    %11 = arith.mulf %10, %6 : vector<8x8xf32>
    %12 = arith.subf %9, %11 : vector<8x8xf32>
    %cst_5 = arith.constant 9.99999996E-13 : f32
    %13 = vector.broadcast %cst_5 : f32 to vector<8x8xf32>
    %14 = arith.maximumf %12, %13 : vector<8x8xf32>
    %c0_6 = arith.constant 0 : index
    %c0_7 = arith.constant 0 : index
    %15 = vector.load %arg1[%c0_6, %c0_7] : memref<8x1xi32, #tpu.memory_space<vmem>>, vector<8x1xi32>
    %c0_8 = arith.constant 0 : index
    %c0_9 = arith.constant 0 : index
    %16 = vector.load %arg2[%c0_8, %c0_9] : memref<1x8xi32, #tpu.memory_space<vmem>>, vector<1x8xi32>
    %17 = vector.broadcast %15 : vector<8x1xi32> to vector<8x8xi32>
    %18 = vector.broadcast %16 : vector<1x8xi32> to vector<8x8xi32>
    %19 = arith.cmpi eq, %17, %18 : vector<8x8xi32>
    %cst_10 = arith.constant 0xFF800000 : f32
    %20 = vector.broadcast %cst_10 : f32 to vector<8x8xf32>
    %21 = arith.select %19, %14, %20 : vector<8x8xi1>, vector<8x8xf32>
    %cst_11 = arith.constant dense<0xFF800000> : vector<8xf32>
    %22 = vector.multi_reduction <maximumf>, %21, %cst_11 [1] : vector<8x8xf32> to vector<8xf32>
    %23 = vector.shape_cast %22 : vector<8xf32> to vector<8x1xf32>
    %cst_12 = arith.constant 0x7F800000 : f32
    %24 = vector.broadcast %cst_12 : f32 to vector<8x8xf32>
    %25 = arith.select %19, %24, %14 : vector<8x8xi1>, vector<8x8xf32>
    %cst_13 = arith.constant dense<0x7F800000> : vector<8xf32>
    %26 = vector.multi_reduction <minimumf>, %25, %cst_13 [1] : vector<8x8xf32> to vector<8xf32>
    %27 = vector.shape_cast %26 : vector<8xf32> to vector<8x1xf32>
    %28 = math.sqrt %23 : vector<8x1xf32>
    %29 = math.sqrt %27 : vector<8x1xf32>
    %30 = arith.subf %28, %29 : vector<8x1xf32>
    %cst_14 = arith.constant 3.000000e-01 : f32
    %31 = vector.broadcast %cst_14 : f32 to vector<8x1xf32>
    %32 = arith.addf %30, %31 : vector<8x1xf32>
    %cst_15 = arith.constant 0.000000e+00 : f32
    %33 = vector.broadcast %cst_15 : f32 to vector<8x1xf32>
    %34 = arith.maximumf %32, %33 : vector<8x1xf32>
    %35 = vector.shape_cast %34 : vector<8x1xf32> to vector<1x8x1xf32>
    %cst_16 = arith.constant dense<0.000000e+00> : vector<1xf32>
    %36 = vector.multi_reduction <add>, %35, %cst_16 [1, 2] : vector<1x8x1xf32> to vector<1xf32>
    %37 = vector.shape_cast %36 : vector<1xf32> to vector<1x1x1xf32>
    %38 = vector.extract %37[0, 0, 0] : f32 from vector<1x1x1xf32>
    %cst_17 = arith.constant 1.250000e-01 : f32
    %39 = arith.mulf %38, %cst_17 : f32
    %c0_18 = arith.constant 0 : index
    %40 = memref.load %arg3[%c0_18] : memref<1xf32, #tpu.memory_space<smem>>
    memref.store %39, %arg3[%c0_18] : memref<1xf32, #tpu.memory_space<smem>>
    %41 = arith.cmpf oge, %27, %23 : vector<8x1xf32>
    %cst_19 = arith.constant 1.000000e+00 : f32
    %cst_20 = arith.constant 0.000000e+00 : f32
    %42 = vector.broadcast %cst_19 : f32 to vector<8x1xf32>
    %43 = vector.broadcast %cst_20 : f32 to vector<8x1xf32>
    %44 = arith.select %41, %42, %43 : vector<8x1xi1>, vector<8x1xf32>
    %45 = vector.shape_cast %44 : vector<8x1xf32> to vector<1x8x1xf32>
    %cst_21 = arith.constant dense<0.000000e+00> : vector<1xf32>
    %46 = vector.multi_reduction <add>, %45, %cst_21 [1, 2] : vector<1x8x1xf32> to vector<1xf32>
    %47 = vector.shape_cast %46 : vector<1xf32> to vector<1x1x1xf32>
    %48 = vector.extract %47[0, 0, 0] : f32 from vector<1x1x1xf32>
    %49 = arith.fptosi %48 : f32 to i32
    %c0_22 = arith.constant 0 : index
    %50 = memref.load %arg4[%c0_22] : memref<1xi32, #tpu.memory_space<smem>>
    memref.store %49, %arg4[%c0_22] : memref<1xi32, #tpu.memory_space<smem>>
    return
  }
}

</mosaic_0001>

<bundles_post_ra>
// kernel: tpu_custom_call.1
= control target key start
LH: loop header
LB: loop body
LE: loop exit
PB: predicated region body
PF: predicated region fallthrough
CT: control target
= control target key end

     0   :  { %10 = vsyncpa [#allocation3], 0  ;;  %vm20_vm0 = vcmask 261120   ;;  %v1175_v1 = vmov 0.0   ;;  %v1176_v4 = vmov 0   ;;  %s1292_s0 = inlined_call_operand.vmem [shape: f32[8,32], index: 0, kind: input, shape index: {}]   ;;  %s1293_s1 = inlined_call_operand.vmem [shape: s32[8,1], index: 1, kind: input, shape index: {}]   ;;  %s1294_s2 = inlined_call_operand.vmem [shape: s32[1,8], index: 2, kind: input, shape index: {}]   ;;  %s1295_s3 = inlined_call_operand.hbm [shape: f32[1], index: 3, kind: output, shape index: {0}]   ;;  %s1296_s4 = inlined_call_operand.hbm [shape: s32[1], index: 4, kind: output, shape index: {1}]  }
   0x1   :  { %v18_v0 = vld [vmem:[%s1292_s0] sm:$0xff]  ;;  %1051 = vmatprep.subr.mxu0 %v1175_v1  ;;  %1081 = vmatprep.subr.mxu1 %v1175_v1  ;;  %v25_v5 = vsel %vm20_vm0, 1.0, %v1176_v4 }
   0x2   :  { %v19_v2 = vmul.f32 %v18_v0, %v18_v0  ;;  %v477_v3 = vsel %vm20_vm0, %v18_v0, 0 }
   0x3   :  { %11 = vsyncpa [#allocation5], 0  ;;  %v1213_v6 = vand.u32 4294901760, %v477_v3  ;;  %vm1177_vm1 = vmmov 0   ;;  %v97_v7 = vsub.f32 %v25_v5, %v25_v5  ;;  %1146 = vset.pattern.permute.xlu0 %v1176_v4  ;;  %v1178_v22 = vmov 1.0   ;;  %v933_v23 = vld [vmem:[%s1293_s1] sm:$0xff] }
   0x4   :  { %1053 = vmatprep.mubr.msk.f32.mxu0 %vm1177_vm1, %v1175_v1  ;;  %1083 = vmatprep.mubr.msk.f32.mxu1 %vm1177_vm1, %v1175_v1  ;;  %v28_v8 = vsel %vm20_vm0, %v19_v2, 0  ;;  %v21_v9 = vsel %vm20_vm0, %v19_v2, 0.0  ;;  %v925_v24 = vlaneseq  ;;  %v1026_v35 = vld [vmem:[%s1294_s2] ss:$0 sm:$0xff]  ;;  %vm944_vm3 = vcmask 64512   ;;  %s1151_s25 = scalar_lea.hbm %s1295_s3, 16 }
   0x5   :  { %v31_v10 = vand.u32 4294901760, %v28_v8  ;;  %1082 = vmatpush3.xpose.msra.mxu1 %v1213_v6  ;;  %v98_v11 = vand.u32 4294901760, %v97_v7  ;;  %v546_v12 = vsub.f32 %v477_v3, %v1213_v6  ;;  %22 = vadd.xlane.f32.xlu0 %v21_v9  ;;  %vm969_vm9 = vcmask 7168   ;;  %p1152_p1 = scmp.ne.s32.totalorder %s1295_s3, %s1151_s25  ;;  %p1155_p2 = scmp.lt.u32.totalorder %s1151_s25, %s1295_s3 }
   0x6   :  { %1086 = vmatprep.subr.mxu1 %v1175_v1  ;;  %v926_v25 = vshrl.u32 %v925_v24, 7 }
   0x7   :  { %1052 = vmatpush3.xpose.msra.mxu0 %v31_v10  ;;  %v108_v13 = vsub.f32 %v28_v8, %v31_v10  ;;  %v99_v14 = vsub.f32 %v97_v7, %v98_v11  ;;  %v547_v15 = vand.u32 4294901760, %v546_v12  ;;  %p1157_p3 = pnand %p1155_p2, %p1152_p1 }
   0x8   :  { %1056 = vmatprep.subr.mxu0 %v1175_v1  ;;  %v927_v26 = vsub.s32 0, %v926_v25 }
   0x9   :  { %v100_v16 = vand.u32 4294901760, %v99_v14  ;;  %v548_v17 = vsub.f32 %v546_v12, %v547_v15  ;;  %v109_v18 = vand.u32 4294901760, %v108_v13 }
   0xb   :  { %1054 = vmatmul.mubr.f32.vlgmr.msra.gmra.mrb[0].mxu0 %v100_v16  ;;  %v549_v19 = vand.u32 4294901760, %v548_v17  ;;  %v110_v20 = vsub.f32 %v108_v13, %v109_v18 }
   0xc   :  { %1058 = vmatprep.mubr.msk.f32.mxu0 %vm1177_vm1, %v1175_v1 }
   0xd   :  { %1084 = vmatmul.mubr.f32.vlgmr.msra.gmra.mrb[0].mxu1 %v549_v19  ;;  %v111_v21 = vand.u32 4294901760, %v110_v20 }
   0xe   :  { %1087 = vmatpush3.xpose.msra.mxu1 %v549_v19  ;;  %1088 = vmatprep.mubr.msk.f32.mxu1 %vm1177_vm1, %v1175_v1 }
   0xf   :  { %1057 = vmatpush3.xpose.msra.mxu0 %v111_v21  ;;  %1091 = vmatprep.subr.mxu1 %v1175_v1 }
  0x10   :  { %1061 = vmatprep.subr.mxu0 %v1175_v1 }
  0x13   :  { %1059 = vmatmul.mubr.msk.f32.vlgmr.msra.gmra.mrb[0].mxu0 %vm20_vm0, %v1178_v22 }
  0x14   :  { %1062 = vmatpush3.xpose.msra.mxu0 %v108_v13  ;;  %1063 = vmatprep.mubr.msk.f32.mxu0 %vm1177_vm1, %v1175_v1 }
  0x15   :  { %1089 = vmatmul.mubr.f32.vlgmr.msra.gmra.mrb[0].mxu1 %v1213_v6  ;;  %1066 = vmatprep.subr.mxu0 %v1175_v1 }
  0x16   :  { %1092 = vmatpush3.xpose.msra.mxu1 %v546_v12  ;;  %1093 = vmatprep.mubr.msk.f32.mxu1 %vm1177_vm1, %v1175_v1 }
  0x17   :  { %1096 = vmatprep.subr.mxu1 %v1175_v1 }
  0x1b   :  { %1064 = vmatmul.mubr.f32.vlgmr.msra.gmra.mrb[0].mxu0 %v97_v7  ;;  %936 = vperm.xlu0 %1146, %v933_v23  }
  0x1c   :  { %1067 = vmatpush3.xpose.msra.mxu0 %v31_v10  ;;  %1068 = vmatprep.mubr.msk.f32.mxu0 %vm1177_vm1, %v1175_v1 }
  0x1d   :  { %1094 = vmatmul.mubr.f32.vlgmr.msra.gmra.mrb[0].mxu1 %v546_v12  ;;  %1071 = vmatprep.subr.mxu0 %v1175_v1 }
  0x1e   :  { %1097 = vmatpush3.xpose.msra.mxu1 %v1213_v6  ;;  %1098 = vmatprep.mubr.msk.f32.mxu1 %vm1177_vm1, %v1175_v1 }
  0x1f   :  { %1101 = vmatprep.subr.mxu1 %v1175_v1 }
  0x23   :  { %1069 = vmatmul.mubr.f32.vlgmr.msra.gmra.mrb[0].mxu0 %v98_v11 }
  0x24   :  { %1072 = vmatpush3.xpose.msra.mxu0 %v109_v18  ;;  %1073 = vmatprep.mubr.msk.f32.mxu0 %vm1177_vm1, %v1175_v1 }
  0x25   :  { %1099 = vmatmul.mubr.f32.vlgmr.msra.gmra.mrb[0].mxu1 %v547_v15  ;;  %1076 = vmatprep.subr.mxu0 %v1175_v1 }
  0x26   :  { %1102 = vmatpush3.xpose.msra.mxu1 %v547_v15  ;;  %1103 = vmatprep.mubr.msk.f32.mxu1 %vm1177_vm1, %v1175_v1 }
  0x27   :  { %1106 = vmatprep.subr.mxu1 %v1175_v1 }
  0x2b   :  { %1074 = vmatmul.mubr.msk.f32.vlgmr.msra.gmra.mrb[0].mxu0 %vm20_vm0, %v1178_v22 }
  0x2c   :  { %1077 = vmatpush3.xpose.msra.mxu0 %v31_v10  ;;  %1078 = vmatprep.mubr.msk.f32.mxu0 %vm1177_vm1, %v1175_v1 }
  0x2d   :  { %1104 = vmatmul.mubr.f32.vlgmr.msra.gmra.mrb[0].mxu1 %v1213_v6 }
  0x2e   :  { %1107 = vmatpush3.xpose.msra.mxu1 %v1213_v6  ;;  %1108 = vmatprep.mubr.msk.f32.mxu1 %vm1177_vm1, %v1175_v1 }
  0x33   :  { %1079 = vmatmul.mubr.msk.f32.vlgmr.msra.gmra.mrb[0].mxu0 %vm20_vm0, %v1178_v22 }
  0x35   :  { %1109 = vmatmul.mubr.f32.vlgmr.msra.gmra.mrb[0].mxu1 %v1213_v6 }
  0x92   :  { %v23_v27 = vpop.xlane.xlu0 %22 }
  0x9a   :  { %v937_v36 = vpop.permute.xlu0 %936 }
  0x9b   :  { %vm942_vm2 = vcmp.eq.s32.totalorder %v937_v36, %v1026_v35 }
 0x106   :  { %v472_v28 = vpop.f32.mrb[0].mxu0 }
 0x107   :  { %v928_v29 = vrot.slane %v472_v28, %v927_v26  ;;  %v1080_v30 = vpop.f32.mrb[1].mxu0 }
 0x108   :  { %v921_v31 = vpop.f32.mrb[0].mxu1 }
 0x109   :  { %v930_v32 = vmul.f32 2.0, %v921_v31  ;;  %v929_v33 = vadd.f32 %v928_v29, %v23_v27  ;;  %v1110_v34 = vpop.f32.mrb[1].mxu1 }
 0x10b   :  { %v931_v37 = vsub.f32 %v929_v33, %v930_v32 }
 0x10d   :  { %v932_v38 = vmax.f32 %v931_v37, 1e-12 }
 0x10f   :  { %v943_v39 = vsel %vm942_vm2, %v932_v38, -inf  ;;  %v948_v41 = vsel %vm942_vm2, inf, %v932_v38 }
 0x110   :  { %v945_v40 = vsel %vm944_vm3, %v943_v39, -inf  ;;  %v949_v42 = vsel %vm944_vm3, %v948_v41, inf }
 0x111   :  { %946 = vmax.xlane.f32.xlu1 %v945_v40 }
 0x115   :  { %950 = vmin.xlane.f32.xlu1 %v949_v42 }
 0x19e   :  { %v947_v43 = vpop.xlane.xlu1 %946 }
 0x19f   :  { %1147 = vrsqrt.f32 %v947_v43  ;;  %vm954_vm4 = vcmp.eq.f32.partialorder %v947_v43, inf  ;;  %v957_v50 = vand.u32 2147483648, %v947_v43  ;;  %vm956_vm6 = vcmp.eq.f32.partialorder %v947_v43, 0.0 }
 0x1a2   :  { %v951_v44 = vpop.xlane.xlu1 %950 }
 0x1a3   :  { %1149 = vrsqrt.f32 %v951_v44  ;;  %vm961_vm5 = vcmp.eq.f32.partialorder %v951_v44, inf  ;;  %v964_v51 = vand.u32 2147483648, %v951_v44  ;;  %vm963_vm7 = vcmp.eq.f32.partialorder %v951_v44, 0.0 }
 0x1a4   :  { %vm983_vm8 = vcmp.ge.f32.partialorder %v951_v44, %v947_v43 }
 0x1a5   :  { %v984_v59 = vsel %vm983_vm8, 1.0, %v1175_v1 }
 0x1a6   :  { %v985_v60 = vsel %vm969_vm9, %v984_v59, 0.0 }
 0x1a9   :  { %v1148_v45 = vpop.eup %1147 }
 0x1aa   :  { %v953_v46 = vmul.f32 %v1148_v45, %v947_v43 }
 0x1ac   :  { %v955_v48 = vsel %vm954_vm4, %v947_v43, %v953_v46 }
 0x1ad   :  { %v1150_v47 = vpop.eup %1149  ;;  %v958_v53 = vsel %vm956_vm6, %v957_v50, %v955_v48 }
 0x1ae   :  { %v960_v49 = vmul.f32 %v1150_v47, %v951_v44 }
 0x1b0   :  { %v962_v52 = vsel %vm961_vm5, %v951_v44, %v960_v49 }
 0x1b1   :  { %v965_v54 = vsel %vm963_vm7, %v964_v51, %v962_v52 }
 0x1b2   :  { %v966_v55 = vsub.f32 %v958_v53, %v965_v54 }
 0x1b4   :  { %v967_v56 = vadd.f32 0.3, %v966_v55 }
 0x1b6   :  { %v968_v57 = vmax.f32 %v967_v56, 0.0 }
 0x1b8   :  { %v970_v58 = vsel %vm969_vm9, %v968_v57, 0.0 }
 0x1b9   :  { %971 = vadd.xlane.f32.xlu1 %v970_v58 }
 0x1bd   :  { %986 = vadd.xlane.f32.xlu1 %v985_v60 }
 0x246   :  { %v972_v61 = vpop.xlane.xlu1 %971 }
 0x247   :  { %v973_v62 = vrot.slane %v972_v61, 4 }
 0x249   :  { %v974_v63 = vadd.f32 %v973_v62, %v972_v61 }
 0x24a   :  { %v987_v0 = vpop.xlane.xlu1 %986 }
 0x24b   :  { %v975_v2 = vrot.slane %v974_v63, 2  ;;  %v988_v3 = vrot.slane %v987_v0, 4 }
 0x24d   :  { %v989_v4 = vadd.f32 %v988_v3, %v987_v0  ;;  %v976_v5 = vadd.f32 %v975_v2, %v974_v63 }
 0x24f   :  { %v990_v6 = vrot.slane %v989_v4, 2  ;;  %v977_v7 = vrot.slane %v976_v5, 1 }
 0x251   :  { %v991_v8 = vadd.f32 %v990_v6, %v989_v4  ;;  %v978_v9 = vadd.f32 %v977_v7, %v976_v5 }
 0x253   :  { %1131 = vpush %v978_v9  ;;  %v992_v10 = vrot.slane %v991_v8, 1 }
 0x255   :  { %v993_v11 = vadd.f32 %v992_v10, %v991_v8 }
 0x257   :  { %1133 = vpush %v993_v11 }
 0x284   :  { %s1132_s2 = spop %1131 }
 0x285   :  { %s980_s19 = smul.f32 0.125, %s1132_s2 }
 0x287   :  { %982 = sst [smem:[#allocation2]] %s980_s19 }
 0x288   :  { %s1134_s20 = spop %1133 }
 0x289   :  { %p1135_p0 = scmp.lt.s32.totalorder %s1134_s20, 0  ;;  %s1136_s21 = sceil.f32 %s1134_s20 }
 0x28a   :  { %s1137_s22 = sfloor.f32 %s1134_s20 }
 0x28b   :  { %1160 = shalt.err (!%p1157_p3)
}
 0x28c   :  { %s1179_s30 = smov [#allocation2]   ;;  %s1298_s21 = smov (!%p1135_p0, %s1136_s21), %s1137_s22 }
 0x28d   :  { %1005 = dma.smem_to_hbm %s1179_s30, 16, %s1295_s3, [#allocation3]  }
 0x28e   :  { %s1139_s7 = scvt.f32.s32 %s1298_s21  ;;  %s1161_s10 = scalar_lea.hbm %s1296_s4, 16 }
 0x28f   :  { %p1162_p4 = scmp.ne.s32.totalorder %s1296_s4, %s1161_s10  ;;  %p1165_p5 = scmp.lt.u32.totalorder %s1161_s10, %s1296_s4 }
 0x290   :  { %997 = sst [smem:[#allocation4]] %s1139_s7 }
 0x291   :  { %p1167_p6 = pnand %p1165_p5, %p1162_p4 }
 0x293   :  { %1170 = shalt.err (!%p1167_p6)
}
 0x294   :  { %s1180_s15 = smov [#allocation4]  }
 0x295   :  { %1013 = dma.smem_to_hbm %s1180_s15, 16, %s1296_s4, [#allocation5]  }
 0x296   :  { %1171 = dma.done.wait [#allocation3], 16  }
 0x297   :  { %1172 = vsyncadd [#allocation3], 4294967280 }
 0x298   :  { %1173 = dma.done.wait [#allocation5], 16  }
 0x299   :  { %1174 = vsyncadd [#allocation5], 4294967280 }
 0x29a   :  { %1020 = sfence }
 0x29b   :  { %1021 = vsyncpa [#allocation3], 1 }
 0x29c   :  { %1022 = vsyncpa [#allocation5], 1 }

</bundles_post_ra>
